<compile_context>
chip_gen: v7x
topology: tpu7x:2x2x1
jax: 0.10.0
libtpu: 0.0.40
codegen_flags: <defaults>
</compile_context>

<pallas_src>
import functools

import jax
import jax.numpy as jnp
from jax.experimental import pallas as pl
from jax.experimental.pallas import tpu as pltpu


def _srm_kernel(x_ref, p_ref, o_ref, *, hw):
    # x_ref / o_ref: (Cb, HW_pad);  p_ref: (Cb, 3) = [w_mean, w_std, bias]
    x = x_ref[...]
    xf = x.astype(jnp.float32)

    # One-pass moments.  Padded spatial lanes are zero, so the sums only see the
    # true `hw` samples; divide by the true counts.
    s1 = jnp.sum(xf, axis=-1, keepdims=True)            # (Cb, 1)
    s2 = jnp.sum(xf * xf, axis=-1, keepdims=True)       # (Cb, 1)
    mean = s1 * (1.0 / hw)
    # Unbiased variance (torch.std default, divisor HW-1).  NOTE: HW == 1 gives
    # a division by zero exactly like torch; clamp guards cancellation only.
    var = jnp.maximum(s2 - s1 * mean, 0.0) / (hw - 1)
    std = jnp.sqrt(var)

    # Grouped Conv1d(k=2, groups=C) == per-channel affine of [mean, std].
    p = p_ref[...].astype(jnp.float32)                  # (Cb, 3)
    z = p[:, 0:1] * mean + p[:, 1:2] * std + p[:, 2:3]  # (Cb, 1)
    g = jax.nn.sigmoid(z)

    # Gate multiply in the input dtype (bf16 stays bf16 on v6e/v7x VALUs;
    # exact no-op for f32 inputs).
    o_ref[...] = (x * g.astype(x.dtype)).astype(o_ref.dtype)


def srm_layer(x, weight, bias, *, target_block_bytes=2 << 20):
    """x: (B, C, H, W); weight: (C, 2) (torch (C,1,2) squeezed); bias: (C,)."""
    b, c, h, w = x.shape
    hw = h * w
    itemsize = jnp.dtype(x.dtype).itemsize

    # Lane-dense spatial axis: pad HW up to a multiple of 128.
    hw_pad = pl.cdiv(hw, 128) * 128

    # Channel tile: keep each (Cb, HW_pad) block around `target_block_bytes`
    # (input + output double-buffered -> ~4x that live in VMEM).
    rows_fit = max(1, target_block_bytes // (hw_pad * itemsize))
    if rows_fit >= c:
        cb = c                        # whole channel axis fits; block == full dim
    else:
        cb = max(8, (rows_fit // 8) * 8)   # keep (8,128)-aligned sublane tiling
    c_pad = pl.cdiv(c, cb) * cb

    x_flat = x.reshape(b, c, hw)
    if hw_pad != hw or c_pad != c:
        x_flat = jnp.pad(x_flat, ((0, 0), (0, c_pad - c), (0, hw_pad - hw)))

    # Pack conv weight + bias into one (C_pad, 3) tensor: [w_mean, w_std, bias].
    params = jnp.concatenate(
        [weight.astype(jnp.float32).reshape(c, 2),
         bias.astype(jnp.float32).reshape(c, 1)], axis=-1)
    if c_pad != c:
        params = jnp.pad(params, ((0, c_pad - c), (0, 0)))

    kernel = functools.partial(_srm_kernel, hw=hw)

    out_flat = pl.pallas_call(
        kernel,
        out_shape=jax.ShapeDtypeStruct((b, c_pad, hw_pad), x.dtype),
        grid_spec=pl.GridSpec(
            grid=(b, c_pad // cb),
            in_specs=[
                pl.BlockSpec((pl.Squeezed(), cb, hw_pad),
                             lambda i, j: (i, j, 0)),          # x tile
                pl.BlockSpec((cb, 3), lambda i, j: (j, 0)),    # packed params
            ],
            out_specs=pl.BlockSpec((pl.Squeezed(), cb, hw_pad),
                                   lambda i, j: (i, j, 0)),
        ),
        compiler_params=pltpu.CompilerParams(
            dimension_semantics=("parallel", "parallel")),
    )(x_flat, params)

    return out_flat[:, :c, :hw].reshape(b, c, h, w)


def reference_srm(x, weight, bias):
    """Pure-JAX reference mirroring the PyTorch forward."""
    b, c, h, w = x.shape
    xf = x.reshape(b, c, -1)
    mean = jnp.mean(xf, axis=-1)
    std = jnp.std(xf, axis=-1, ddof=1)
    z = weight[None, :, 0] * mean + weight[None, :, 1] * std + bias[None, :]
    g = jax.nn.sigmoid(z).reshape(b, c, 1, 1)
    return x * g


if __name__ == "__main__":
    key = jax.random.PRNGKey(0)
    kx, kw, kb = jax.random.split(key, 3)

    B, C, H, W = 2, 4, 16, 16
    x = jax.random.normal(kx, (B, C, H, W), dtype=jnp.float32)

    # Conv1d(channel, channel, k=2, groups=channel) params: torch weight is
    # (C, 1, 2) -> flattened to (C, 2); bias (C,).
    weight = jax.random.normal(kw, (C, 2), dtype=jnp.float32) * 0.5
    bias = jax.random.normal(kb, (C,), dtype=jnp.float32) * 0.1

    out = srm_layer(x, weight, bias)
    out = jax.block_until_ready(out)

    ref = reference_srm(x, weight, bias)
    assert out.shape == (B, C, H, W)
    assert jnp.allclose(out, ref, atol=1e-5, rtol=1e-5), "mismatch vs reference"

    print("KERNEL_OK")
</pallas_src>

<mosaic_0001>
module attributes {stable_mosaic.version = 11 : i64} {
  func.func @_srm_kernel(%arg0: i32, %arg1: i32, %arg2: memref<1x4x256xf32, #tpu.memory_space<vmem>>, %arg3: memref<4x3xf32, #tpu.memory_space<vmem>>, %arg4: memref<1x4x256xf32, #tpu.memory_space<vmem>>) attributes {dimension_semantics = [#tpu.dimension_semantics<parallel>, #tpu.dimension_semantics<parallel>], iteration_bounds = array<i64: 2, 1>, scalar_prefetch = 0 : i64, scratch_operands = 0 : i64, tpu.core_type = #tpu.core_type<tc>, window_params = [{transform_indices = @transform_0, window_bounds = array<i64: 1, 4, 256>}, {transform_indices = @transform_1, window_bounds = array<i64: 4, 3>}, {transform_indices = @transform_2, window_bounds = array<i64: 1, 4, 256>}]} {
    %c0 = arith.constant 0 : index
    %c0_0 = arith.constant 0 : index
    %c0_1 = arith.constant 0 : index
    %0 = vector.load %arg2[%c0, %c0_0, %c0_1] : memref<1x4x256xf32, #tpu.memory_space<vmem>>, vector<1x4x256xf32>
    %1 = vector.shape_cast %0 : vector<1x4x256xf32> to vector<4x256xf32>
    %cst = arith.constant dense<0.000000e+00> : vector<4xf32>
    %2 = vector.multi_reduction <add>, %1, %cst [1] : vector<4x256xf32> to vector<4xf32>
    %3 = vector.shape_cast %2 : vector<4xf32> to vector<4x1xf32>
    %4 = arith.mulf %1, %1 : vector<4x256xf32>
    %cst_2 = arith.constant dense<0.000000e+00> : vector<4xf32>
    %5 = vector.multi_reduction <add>, %4, %cst_2 [1] : vector<4x256xf32> to vector<4xf32>
    %6 = vector.shape_cast %5 : vector<4xf32> to vector<4x1xf32>
    %cst_3 = arith.constant 3.906250e-03 : f32
    %7 = vector.broadcast %cst_3 : f32 to vector<4x1xf32>
    %8 = arith.mulf %3, %7 : vector<4x1xf32>
    %9 = arith.mulf %3, %8 : vector<4x1xf32>
    %10 = arith.subf %6, %9 : vector<4x1xf32>
    %cst_4 = arith.constant 0.000000e+00 : f32
    %11 = vector.broadcast %cst_4 : f32 to vector<4x1xf32>
    %12 = arith.maximumf %10, %11 : vector<4x1xf32>
    %cst_5 = arith.constant 2.550000e+02 : f32
    %13 = vector.broadcast %cst_5 : f32 to vector<4x1xf32>
    %14 = arith.divf %12, %13 : vector<4x1xf32>
    %15 = math.sqrt %14 : vector<4x1xf32>
    %c0_6 = arith.constant 0 : index
    %c0_7 = arith.constant 0 : index
    %16 = vector.load %arg3[%c0_6, %c0_7] : memref<4x3xf32, #tpu.memory_space<vmem>>, vector<4x3xf32>
    %17 = vector.extract_strided_slice %16 {offsets = [0, 0], sizes = [4, 1], strides = [1, 1]} : vector<4x3xf32> to vector<4x1xf32>
    %18 = arith.mulf %17, %8 : vector<4x1xf32>
    %19 = vector.extract_strided_slice %16 {offsets = [0, 1], sizes = [4, 1], strides = [1, 1]} : vector<4x3xf32> to vector<4x1xf32>
    %20 = arith.mulf %19, %15 : vector<4x1xf32>
    %21 = arith.addf %18, %20 : vector<4x1xf32>
    %22 = vector.extract_strided_slice %16 {offsets = [0, 2], sizes = [4, 1], strides = [1, 1]} : vector<4x3xf32> to vector<4x1xf32>
    %23 = arith.addf %21, %22 : vector<4x1xf32>
    %24 = arith.negf %23 : vector<4x1xf32>
    %25 = math.exp %24 : vector<4x1xf32>
    %cst_8 = arith.constant 1.000000e+00 : f32
    %26 = vector.broadcast %cst_8 : f32 to vector<4x1xf32>
    %27 = arith.addf %26, %25 : vector<4x1xf32>
    %28 = arith.divf %26, %27 : vector<4x1xf32>
    %29 = vector.broadcast %28 : vector<4x1xf32> to vector<4x256xf32>
    %30 = arith.mulf %1, %29 : vector<4x256xf32>
    %c0_9 = arith.constant 0 : index
    %c0_10 = arith.constant 0 : index
    %c0_11 = arith.constant 0 : index
    %31 = vector.load %arg4[%c0_9, %c0_10, %c0_11] : memref<1x4x256xf32, #tpu.memory_space<vmem>>, vector<1x4x256xf32>
    %32 = vector.shape_cast %31 : vector<1x4x256xf32> to vector<4x256xf32>
    %33 = vector.shape_cast %30 : vector<4x256xf32> to vector<1x4x256xf32>
    tpu.vector_store %arg4[%c0_9, %c0_10, %c0_11], %33 {strides = array<i32>} : memref<1x4x256xf32, #tpu.memory_space<vmem>>, vector<1x4x256xf32>,
    return
  }
  func.func @transform_0(%arg0: i32, %arg1: i32) -> (i32, i32, i32) {
    %c0_i32 = arith.constant 0 : i32
    %c0_i32_0 = arith.constant 0 : i32
    return %arg0, %arg1, %c0_i32 : i32, i32, i32
  }
  func.func @transform_1(%arg0: i32, %arg1: i32) -> (i32, i32) {
    %c0_i32 = arith.constant 0 : i32
    %c0_i32_0 = arith.constant 0 : i32
    return %arg1, %c0_i32 : i32, i32
  }
  func.func @transform_2(%arg0: i32, %arg1: i32) -> (i32, i32, i32) {
    %c0_i32 = arith.constant 0 : i32
    %c0_i32_0 = arith.constant 0 : i32
    return %arg0, %arg1, %c0_i32 : i32, i32, i32
  }
}

</mosaic_0001>

<bundles_post_ra>
// kernel: tpu_custom_call.1
= control target key start
LH: loop header
LB: loop body
LE: loop exit
PB: predicated region body
PF: predicated region fallthrough
CT: control target
= control target key end

     0   :  { %7 = vsyncpa [#allocation3], 0  ;;  %s869_s0 = inlined_call_operand.hbm [shape: f32[2,4,256], index: 0, kind: input, shape index: {}]   ;;  %s870_s1 = inlined_call_operand.hbm [shape: f32[4,3], index: 1, kind: input, shape index: {}]   ;;  %s871_s2 = inlined_call_operand.hbm [shape: f32[2,4,256], index: 2, kind: output, shape index: {}]  }
   0x1   :  { %9 = vsyncpa [#allocation3 + $0x1], 0 }
   0x2   :  { %10 = vsyncpa [#allocation6], 0 }
   0x3   :  { %11 = vsyncpa [#allocation4], 0 }
   0x4   :  { %13 = vsyncpa [#allocation4 + $0x1], 0  ;;  %s649_s9 = smov 0   ;;  %s651_s10 = smov 0  }
   0x5   :  { %s653_s11 = smov 0   ;;  %s655_s12 = smov 0  }
   0x6   :  { %s657_s13 = smov 0   ;;  %s659_s14 = smov 0  }
   0x7 LB: > { %s376_s15 = sadd.s32 4294967295, %s625_s14   ;;  %s377_s16 = sadd.s32 4294967294, %s625_s14   ;;  %s625_s14 = sphi %s659_s14, %s19_s14   ;;  %s621_s13 = sphi %s657_s13, %s896_s13   ;;  %s617_s12 = sphi %s655_s12, %s895_s12   ;;  %s613_s11 = sphi %s653_s11, %s894_s11   ;;  %s609_s10 = sphi %s651_s10, %s893_s10   ;;  %s605_s9 = sphi %s649_s9, %s892_s9  }
   0x8   : > { %p53_p0 = scmp.ne.s32.totalorder %s609_s10, %s605_s9  ;;  %p683_p1 = scmp.eq.s32.totalorder %s376_s15, 0 }
   0x9   : > { %p687_p2 = scmp.eq.s32.totalorder %s376_s15, 1  ;;  %p111_p3 = scmp.eq.s32.totalorder %s377_s16, 1 }
   0xa   : > { %s876_s17 = scalar_select %p683_p1, 1, 0 }
   0xb   : > { %s877_s18 = scalar_select %p687_p2, 1, 0 }
   0xc   : > { %p693_p4 = por %p683_p1, %p53_p0  ;;  %p378_p5 = scmp.ge.s32.totalorder %s625_s14, 1 }
   0xd   : > { %p698_p6 = por %p111_p3, %p53_p0  ;;  %p118_p7 = scmp.lt.s32.totalorder %s625_s14, 3 }
   0xe   : > { %s878_s19 = scalar_select %p693_p4, 1, 0 }
   0xf   : > { %s879_s20 = scalar_select %p698_p6, 1, 0 }
  0x10   : > { %p703_p8 = pnand %p378_p5, %p118_p7  ;;  %s627_s22 = smov [#allocation5]  }
  0x11   : > { %s133_s23 = sshll.u32 %s627_s22, 4  ;;  %s31_s25 = sadd.s32 1, %s621_s13  ;;  %s134_s23 = int_to_ptr.vmem [resolvable:$true] %s133_s23 }
  0x12   : > { %s880_s21 = scalar_select %p703_p8, 1, 0 }
  0x13   : > { %p404_p10 = pneg %p703_p8  ;;  %s40_s26 = sadd.s32 1, %s613_s11 }
  0x14   : > { %p718_p12 = scmp.ge.s32.totalorder %s31_s25, 2  ;;  %s481_s30 = scalar_lea.hbm %s870_s1, 64 }
  0x15   : > { %p712_p11 = pnand %p404_p10, %p683_p1  ;;  %p482_p13 = scmp.ne.s32.totalorder %s870_s1, %s481_s30 }
  0x16   : > { %s882_s27 = scalar_select %p718_p12, 1, 0 }
  0x17   : > { %p483_p0 = pneg %p712_p11  ;;  %p488_p7 = scmp.lt.u32.totalorder %s481_s30, %s870_s1 }
  0x19   : > { %p484_p3 = pnand %p483_p0, %p482_p13 }
  0x1b   : > { %p485_p5 = pneg %p484_p3 }
  0x1d   : > { %p490_p10 = pnand %p488_p7, %p485_p5 }
  0x1f   : > { %493 = shalt.err (!%p490_p10)
}
  0x20   : > { %s494_s7 = scalar_lea.vmem %s134_s23, 64  ;;  %p502_p4 = scmp.lt.s32.totalorder %s134_s23, %s134_s23 }
  0x21   : > { %p495_p9 = scmp.ne.s32.totalorder %s134_s23, %s494_s7  ;;  %p503_p8 = scmp.lt.s32.totalorder %s494_s7, %s494_s7 }
  0x23   : > { %p497_p6 = pnand %p495_p9, %p483_p0  ;;  %p504_p2 = por %p503_p8, %p502_p4 }
  0x25   : > { %p498_p1 = pneg %p497_p6 }
  0x27   : > { %p505_p12 = pnand %p504_p2, %p498_p1 }
  0x29   : > { %508 = shalt.err (!%p505_p12)
}
  0x2a   : > { %407 = dma.hbm_to_vmem [thread:$0]  (!%p712_p11), %s870_s1, 64, %s134_s23, [#allocation6]  }
  0x2b   : > { %p883_p4 = scmp.ne.s32.totalorder %s882_s27, 0  ;;  %p47_p1 = scmp.ne.s32.totalorder %s613_s11, %s609_s10 }
  0x2c   : > { %p48_p2 = scmp.eq.s32.totalorder %s625_s14, 0  ;;  %p417_p6 = scmp.lt.s32.totalorder %s625_s14, 2 }
  0x2d   : > { %s898_s25 = smov (%p883_p4, %s31_s25), 0  ;;  %p884_p12 = scmp.ne.s32.totalorder %s877_s18, 0 }
  0x2e   : > { %s35_s16 = ssub.s32 %s621_s13, %s898_s25  ;;  %p49_p9 = por %p48_p2, %p47_p1 }
  0x2f   : > { %p38_p8 = scmp.eq.s32.totalorder %s35_s16, 0  ;;  %p750_p13 = por %p884_p12, %p47_p1 }
  0x30   : > { %s144_s24 = sand.u32 1, %s613_s11   ;;  %s394_s27 = sshll.u32 %s621_s13, 7 }
  0x31   : > { %s758_s28 = scalar_select %p38_p8, %s613_s11, %s40_s26  }
  0x32   : > { %s381_s23 = sshll.u32 %s144_s24, 3  ;;  %s764_s3 = scalar_lea.hbm %s869_s0, %s394_s27 }
  0x33   : > { %s148_s18 = scalar_lea.vmem [#allocation2], %s381_s23  ;;  %p768_p11 = pnand %p417_p6, %p49_p9 }
  0x34   : > { %s158_s4 = sshll.u32 %s148_s18, 4  ;;  %s145_s26 = scalar_lea.sflag [#allocation3], %s144_s24  ;;  %s766_s4 = int_to_ptr.vmem [resolvable:$true] %s158_s4 }
  0x35   : > { %s509_s6 = scalar_lea.hbm %s764_s3, 128  ;;  %p511_p3 = pneg %p768_p11 }
  0x36   : > { %p510_p0 = scmp.ne.s32.totalorder %s764_s3, %s509_s6  ;;  %s514_s15 = scalar_lea.hbm %s869_s0, 256 }
  0x37   : > { %p515_p10 = scmp.lt.u32.totalorder %s764_s3, %s869_s0  ;;  %p516_p4 = scmp.lt.u32.totalorder %s514_s15, %s509_s6 }
  0x38   : > { %p512_p5 = pnand %p511_p3, %p510_p0  ;;  %p518_p2 = scmp.lt.u32.totalorder %s509_s6, %s764_s3 }
  0x39   : > { %p517_p1 = por %p516_p4, %p515_p10 }
  0x3a   : > { %p513_p7 = pneg %p512_p5 }
  0x3b   : > { %p519_p6 = por %p518_p2, %p517_p1 }
  0x3d   : > { %p520_p8 = pnand %p519_p6, %p513_p7 }
  0x3f   : > { %523 = shalt.err (!%p520_p8)
}
  0x40   : > { %s524_s24 = scalar_lea.vmem %s766_s4, 128  ;;  %s628_s27 = smov [#allocation2]  }
  0x41   : > { %p525_p9 = scmp.ne.s32.totalorder %s766_s4, %s524_s24  ;;  %s529_s29 = sshll.u32 %s628_s27, 4  ;;  %s530_s29 = int_to_ptr.vmem [resolvable:$false] %s529_s29 }
  0x42   : > { %s531_s30 = scalar_lea.vmem %s530_s29, 256  ;;  %p532_p5 = scmp.lt.s32.totalorder %s766_s4, %s530_s29 }
  0x43   : > { %p527_p12 = pnand %p525_p9, %p511_p3  ;;  %p533_p10 = scmp.lt.s32.totalorder %s531_s30, %s524_s24 }
  0x45   : > { %p528_p0 = pneg %p527_p12  ;;  %p534_p4 = por %p533_p10, %p532_p5 }
  0x47   : > { %p535_p1 = pnand %p534_p4, %p528_p0 }
  0x49   : > { %538 = shalt.err (!%p535_p1)
}
  0x4a   : > { %411 = dma.hbm_to_vmem [thread:$0]  (!%p768_p11), %s764_s3, 128, %s766_s4, %s145_s26  }
  0x4b   : > { %p887_p7 = scmp.ne.s32.totalorder %s880_s21, 0 }
  0x4c   : > { %s800_s18 = sand.u32 (!%p887_p7), 1, %s609_s10   ;;  %p888_p3 = scmp.ne.s32.totalorder (!%p887_p7), %s878_s19, 0 }
  0x4d   : > { %167 = sbr.rel (%p887_p7) target bundleno = 556 (0x22c), region = 28  ;;  %s385_s6 = sshll.u32 (!%p887_p7), %s800_s18, 3 }
  0x4e   : > { %s170_s7 = scalar_lea.sflag (!%p887_p7), [#allocation3], %s800_s18  ;;  %s173_s8 = scalar_lea.vmem (!%p887_p7), [#allocation2], %s385_s6 }
  0x54   : > { %592 = dma.done.wait (%p888_p3), %s170_s7, 128  }
  0x55   : > { %594 = vsyncadd (%p888_p3), %s170_s7, 4294967168  ;;  %p889_p11 = scmp.ne.s32.totalorder %s876_s17, 0 }
  0x57   : > { %596 = dma.done.wait (%p889_p11), [#allocation6], 64  }
  0x58   : > { %598 = vsyncadd (%p889_p11), [#allocation6], 4294967232  ;;  %vm202_vm0 = vcmask 1043456   ;;  %v198_v0 = vld [vmem:[%s173_s8] sm:$0xff]  ;;  %v230_v11 = vld [vmem:[#allocation5] sm:$0xf]  ;;  %v256_v36 = vlaneseq }
  0x59   : > { %v200_v1 = vcombine.high %v198_v0, %v198_v0  ;;  %v203_v2 = vsel %vm202_vm0, %v198_v0, 0.0  ;;  %v208_v3 = vmul.f32 %v198_v0, %v198_v0  ;;  %s629_s17 = smov 127   ;;  %s630_s19 = smov 126   ;;  %v631_v25 = vmov 0  }
  0x5a   : > { %473 = vset.pattern.permute.xlu0 %v631_v25  ;;  %v632_v34 = vmov 839922192   ;;  %v257_v38 = vshrl.u32 %v256_v36, 7  ;;  %s395_s21 = sshll.u32 %s617_s12, 7  ;;  %s197_s3 = scalar_lea.vmem [#allocation7], %s385_s6 }
  0x5b   : > { %v204_v4 = vsel %vm202_vm0, %v200_v1, 0.0  ;;  %v210_v5 = vcombine.high %v208_v3, %v208_v3  ;;  %v212_v6 = vsel %vm202_vm0, %v208_v3, 0.0  ;;  %v254_v35 = vunpack.c.l.s4 %v632_v34  ;;  %s280_s4 = sshll.u32 %s197_s3, 4  ;;  %s820_s15 = scalar_lea.hbm %s871_s2, %s395_s21  ;;  %s822_s4 = int_to_ptr.vmem [resolvable:$true] %s280_s4 }
  0x5c   : > { %v205_v7 = vadd.f32 %v204_v4, %v203_v2  ;;  %s264_s16 = scalar_lea.sflag [#allocation4], %s800_s18  ;;  %s539_s23 = scalar_lea.vmem %s822_s4, 128 }
  0x5d   : > { %v213_v8 = vsel %vm202_vm0, %v210_v5, 0.0  ;;  %v255_v37 = vunpack.c.0.s8 %v254_v35  ;;  %p540_p2 = scmp.ne.s32.totalorder %s822_s4, %s539_s23  ;;  %s633_s12 = smov [#allocation7]  }
  0x5e   : > { %206 = vadd.xlane.f32.xlu0 %v205_v7  ;;  %v214_v9 = vadd.f32 %v213_v8, %v212_v6  ;;  %s543_s24 = sshll.u32 %s633_s12, 4  ;;  %s544_s24 = int_to_ptr.vmem [resolvable:$false] %s543_s24 }
  0x5f   : > { %v258_v39 = vsub.s32 %v255_v37, %v257_v38  ;;  %p541_p6 = pnand %p540_p2, %p750_p13  ;;  %s545_s27 = scalar_lea.vmem %s544_s24, 256 }
  0x60   : > { %p546_p9 = scmp.lt.s32.totalorder %s822_s4, %s544_s24  ;;  %p547_p12 = scmp.lt.s32.totalorder %s545_s27, %s539_s23 }
  0x61   : > { %p542_p8 = pneg %p541_p6 }
  0x62   : > { %215 = vadd.xlane.f32.xlu0 %v214_v9  ;;  %p548_p0 = por %p547_p12, %p546_p9 }
  0x64   : > { %p549_p5 = pnand %p548_p0, %p542_p8 }
  0xeb   : > { %v207_v10 = vpop.xlane.xlu0 %206 }
  0xec   : > { %v217_v12 = vmul.f32 0.00390625, %v207_v10 }
  0xee   : > { %v218_v13 = vmul.f32 %v217_v12, %v207_v10  ;;  %v231_v14 = vmul.f32 %v230_v11, %v217_v12 }
  0xef   : > { %v216_v15 = vpop.xlane.xlu0 %215 }
  0xf0   : > { %v219_v16 = vsub.f32 %v216_v15, %v218_v13 }
  0xf2   : > { %v220_v17 = vmax.f32 %v219_v16, 0.0 }
  0xf4   : > { %v222_v18 = vmul.f32 0.003921569, %v220_v17 }
  0xf6   : > { %475 = vrsqrt.f32 %v222_v18  ;;  %vm225_vm1 = vcmp.eq.f32.partialorder %v222_v18, inf  ;;  %v228_v21 = vand.u32 2147483648, %v222_v18  ;;  %vm227_vm2 = vcmp.eq.f32.partialorder %v222_v18, 0.0 }
 0x100   : > { %v476_v19 = vpop.eup %475 }
 0x101   : > { %v224_v20 = vmul.f32 %v476_v19, %v222_v18 }
 0x103   : > { %v226_v22 = vsel %vm225_vm1, %v222_v18, %v224_v20 }
 0x104   : > { %v229_v23 = vsel %vm227_vm2, %v228_v21, %v226_v22 }
 0x105   : > { %v232_v24 = vmul.f32 %v230_v11, %v229_v23 }
 0x107   : > { %234 = vrot.lane.b32.xlu1 %v232_v24, %s629_s17 }
 0x10b   : > { %239 = vrot.lane.b32.xlu1 %v230_v11, %s630_s19 }
 0x179   : > { %v235_v26 = vpop.permute.xlu1 %234 }
 0x17a   : > { %v237_v27 = vadd.f32 %v235_v26, %v231_v14 }
 0x17d   : > { %v240_v28 = vpop.permute.xlu1 %239 }
 0x17e   : > { %v242_v29 = vadd.f32 %v240_v28, %v237_v27 }
 0x180   : > { %v388_v30 = vmul.f32 -1.442695, %v242_v29 }
 0x182   : > { %477 = vpow2.f32 %v388_v30 }
 0x18c   : > { %v478_v31 = vpop.eup %477 }
 0x18d   : > { %v246_v32 = vadd.f32 1.0, %v478_v31 }
 0x18f   : > { %479 = vrcp.f32 %v246_v32 }
 0x199   : > { %v480_v33 = vpop.eup %479 }
 0x19a   : > { %251 = vperm.xlu0 %473, %v480_v33  }
 0x219   : > { %v252_v40 = vpop.permute.xlu0 %251 }
 0x21a   : > { %v259_v41 = vrot.slane %v252_v40, %v258_v39 }
 0x21c   : > { %v261_v42 = vmul.f32 %v259_v41, %v198_v0 }
 0x21e   : > { %262 = vst [vmem:[%s197_s3] sm:$0xff] %v261_v42 }
 0x21f   : > { %552 = shalt.err (!%p549_p5)
}
 0x220   : > { %s553_s29 = scalar_lea.hbm %s820_s15, 128  ;;  %s557_s6 = scalar_lea.hbm %s871_s2, 256 }
 0x221   : > { %p554_p10 = scmp.ne.s32.totalorder %s820_s15, %s553_s29  ;;  %p558_p7 = scmp.lt.u32.totalorder %s820_s15, %s871_s2 }
 0x222   : > { %p559_p3 = scmp.lt.u32.totalorder %s557_s6, %s553_s29  ;;  %p561_p2 = scmp.lt.u32.totalorder %s553_s29, %s820_s15 }
 0x223   : > { %p555_p4 = pnand %p554_p10, %p750_p13 }
 0x224   : > { %p560_p11 = por %p559_p3, %p558_p7 }
 0x225   : > { %p556_p1 = pneg %p555_p4 }
 0x226   : > { %p562_p6 = por %p561_p2, %p560_p11 }
 0x228   : > { %p563_p8 = pnand %p562_p6, %p556_p1 }
 0x22a   : > { %566 = shalt.err (!%p563_p8)
}
 0x22b   : > { %402 = dma.vmem_to_hbm [thread:$0]  (%p750_p13), %s822_s4, 128, %s820_s15, %s264_s16  }
 0x22c PF: > { %s292_s17 = sand.u32 1, %s605_s9   ;;  %p890_p9 = scmp.ne.s32.totalorder %s879_s20, 0 }
 0x22d   : > { %p891_p12 = scmp.ge.s32.totalorder %s625_s14, 2  ;;  %s293_s19 = scalar_lea.sflag [#allocation4], %s292_s17 }
 0x22f   : > { %p413_p0 = pnand %p891_p12, %p890_p9 }
 0x231   : > { %600 = dma.done.wait (!%p413_p0), %s293_s19, 128  }
 0x232   : > { %602 = vsyncadd (!%p413_p0), %s293_s19, 4294967168  ;;  %s19_s14 = sadd.s32 1, %s625_s14   ;;  %s892_s9 = smov %s609_s10 }
 0x233   : > { %p16_p5 = scmp.ge.s32.totalorder %s19_s14, 4   ;;  %s893_s10 = smov %s613_s11 }
 0x234   : > { %s894_s11 = smov %s758_s28  ;;  %s895_s12 = smov %s621_s13 }
 0x235   : > { %s896_s13 = smov %s898_s25  ;;  %18 = sbr.rel (!%p16_p5) target bundleno = 7 (0x7), region = 78 }
 0x23c   :  { %298 = vsyncpa [#allocation3], 1 }
 0x23d   :  { %300 = vsyncpa [#allocation3 + $0x1], 1 }
 0x23e   :  { %301 = vsyncpa [#allocation6], 1 }
 0x23f   :  { %302 = vsyncpa [#allocation4], 1 }
 0x240   :  { %304 = vsyncpa [#allocation4 + $0x1], 1 }

</bundles_post_ra>
